<compile_context>
chip_gen: v7x
topology: tpu7x:2x2x1
jax: 0.10.0
libtpu: 0.0.40
codegen_flags: <defaults>
</compile_context>

<pallas_src>
import math

import jax
import jax.numpy as jnp
from jax.experimental import pallas as pl
from jax.experimental.pallas import tpu as pltpu


def _round_up(x, m):
    return ((x + m - 1) // m) * m


def _qkv_matmul_kernel(x_ref, w_ref, b_ref, o_ref, acc_ref):
    """One (tm, tn) output tile, accumulated over the K grid axis."""
    k = pl.program_id(2)

    # Fold the bias into the accumulator init: removes a VPU add from the
    # epilogue that sits on the critical store path of every output tile.
    @pl.when(k == 0)
    def _():
        acc_ref[...] = jnp.broadcast_to(
            b_ref[...].astype(jnp.float32), acc_ref.shape
        )

    # MXU matmul (bf16 operands by default) with f32 accumulation.
    acc_ref[...] += jnp.dot(
        x_ref[...], w_ref[...], preferred_element_type=jnp.float32
    )

    @pl.when(k == pl.num_programs(2) - 1)
    def _():
        o_ref[...] = acc_ref[...].astype(o_ref.dtype)


def _qkv_matmul_padded(xp, wp, bp, *, tm, tn, tk, out_dtype):
    """xp: (Mp, Kp), wp: (Kp, Np), bp: (1, Np) — all tile-aligned -> (Mp, Np)."""
    Mp, Kp = xp.shape
    Kp2, Np = wp.shape
    assert Kp == Kp2 and bp.shape == (1, Np)
    assert Mp % tm == 0 and Np % tn == 0 and Kp % tk == 0

    grid = (Mp // tm, Np // tn, Kp // tk)

    bytes_accessed = (
        xp.size * xp.dtype.itemsize * grid[1]      # x re-read once per N tile
        + wp.size * wp.dtype.itemsize * grid[0]    # W re-read once per M tile
        + bp.size * bp.dtype.itemsize
        + Mp * Np * jnp.dtype(out_dtype).itemsize  # output written once
    )

    return pl.pallas_call(
        _qkv_matmul_kernel,
        out_shape=jax.ShapeDtypeStruct((Mp, Np), out_dtype),
        grid_spec=pltpu.PrefetchScalarGridSpec(
            num_scalar_prefetch=0,
            grid=grid,
            in_specs=[
                pl.BlockSpec((tm, tk), lambda i, j, k: (i, k)),
                pl.BlockSpec((tk, tn), lambda i, j, k: (k, j)),
                pl.BlockSpec((1, tn), lambda i, j, k: (0, j)),
            ],
            out_specs=pl.BlockSpec((tm, tn), lambda i, j, k: (i, j)),
            scratch_shapes=[pltpu.VMEM((tm, tn), jnp.float32)],
        ),
        compiler_params=pltpu.CompilerParams(
            dimension_semantics=("parallel", "parallel", "arbitrary"),
            # 48 MiB: above v5e's 16 MiB scoped default so 512-wide bf16 tiles
            # double-buffer comfortably, still under v7x's 64 MiB physical VMEM.
            vmem_limit_bytes=48 * 1024 * 1024,
        ),
        cost_estimate=pl.CostEstimate(
            flops=2 * Mp * Np * Kp,
            bytes_accessed=bytes_accessed,
            transcendentals=0,
        ),
    )(xp, wp, bp)


class QKVProj:
    """JAX/Pallas port of the PyTorch qkv_proj module (fused QKV linear)."""

    def __init__(self, d_in, d_out, num_heads, key, *,
                 compute_dtype=jnp.bfloat16, out_dtype=jnp.float32,
                 tm=512, tn=512, tk=1024):
        assert (3 * d_out) % num_heads == 0 and d_out % num_heads == 0
        self.d_in = d_in
        self.d_out = d_out
        self.num_heads = num_heads
        self.dh = d_out // num_heads
        self.compute_dtype = compute_dtype
        self.out_dtype = out_dtype
        self.tm_max = tm

        N, K = 3 * d_out, d_in
        k_w, k_b = jax.random.split(key)
        # PyTorch nn.Linear default init: U(-1/sqrt(d_in), 1/sqrt(d_in)).
        bound = 1.0 / math.sqrt(d_in)
        # Logical weight (d_in, 3*d_out) = transpose of PyTorch's (3*d_out, d_in).
        # Logical column order is the per-head [q|k|v] interleave implied by the
        # PyTorch reshape(B, S, H, 3*dh) + chunk(3, dim=-1).
        self.w = jax.random.uniform(k_w, (K, N), jnp.float32,
                                    minval=-bound, maxval=bound)
        self.b = jax.random.uniform(k_b, (N,), jnp.float32,
                                    minval=-bound, maxval=bound)

        # ---- one-time (init-side) preprocessing of weight/bias ----
        # (1) Pre-permute columns so stored column (c, h, d) holds logical column
        #     h*3*dh + c*dh + d: q/k/v become contiguous [Q|K|V] column ranges of
        #     the kernel output and the post-kernel split is a plain slice.
        H, dh = num_heads, self.dh
        perm = (jnp.arange(3)[:, None, None] * dh
                + jnp.arange(H)[None, :, None] * 3 * dh
                + jnp.arange(dh)[None, None, :]).reshape(-1)
        w_qkv = self.w[:, perm]
        b_qkv = self.b[perm]

        # (2) Pick K/N tiles once (they depend only on K, N).  Ensure >= 2 N
        #     blocks when possible so v7x's second TensorCore gets work even for
        #     single-M-tile (decode) shapes.
        Na = _round_up(N, 128)
        Ka = _round_up(K, 128)
        self.tn = min(tn, Na)
        if _round_up(N, self.tn) // self.tn == 1 and Na >= 256:
            self.tn = 128 * max(1, (Na // 128) // 2)
        self.tk = min(tk, Ka)
        self.Kp = _round_up(K, self.tk)
        self.Np = _round_up(N, self.tn)

        # (3) Pad + cast ONCE — no per-call pass over the full KxN weight.
        self.wp = jnp.pad(
            w_qkv, ((0, self.Kp - K), (0, self.Np - N))
        ).astype(compute_dtype)
        # Bias stays f32: it is folded into the f32 accumulator in-kernel.
        self.bp = jnp.pad(b_qkv, (0, self.Np - N)).reshape(1, self.Np)

    def __call__(self, x):
        # x: (B, S, d_in)
        B, S, _ = x.shape
        M = B * S
        d_out, H, dh = self.d_out, self.num_heads, self.dh

        # Per-call glue touches only the activations.  Small-M (decode) shapes:
        # clamp tm to a 16-row multiple (bf16 sublane packing) instead of 128 so
        # we never DMA/multiply/store 100+ all-zero padded rows.
        tm = min(self.tm_max, _round_up(M, 16))
        Mp = _round_up(M, tm)

        x2d = x.reshape(M, self.d_in).astype(self.compute_dtype)
        if Mp != M or self.Kp != self.d_in:
            x2d = jnp.pad(x2d, ((0, Mp - M), (0, self.Kp - self.d_in)))

        y = _qkv_matmul_padded(x2d, self.wp, self.bp,
                               tm=tm, tn=self.tn, tk=self.tk,
                               out_dtype=self.out_dtype)
        y = y[:M, :3 * d_out]                       # strip padding

        # TODO(synk): emit the head-major (B, H, S, dh) layout directly from the
        # kernel's out_spec (j iterating (head, dh) blocks) so this transpose
        # disappears; skipped because dh < 128 would force lane-sparse output
        # tiles at these head sizes.
        def _heads(cols):
            return jnp.transpose(cols.reshape(B, S, H, dh), (0, 2, 1, 3))

        q = _heads(y[:, 0:d_out])
        k = _heads(y[:, d_out:2 * d_out])
        v = _heads(y[:, 2 * d_out:3 * d_out])
        return q, k, v


if __name__ == "__main__":
    key = jax.random.PRNGKey(0)
    k_x, k_p = jax.random.split(key)

    batch, seq, d_in, d_out, num_heads = 2, 8, 32, 32, 4
    x = jax.random.normal(k_x, (batch, seq, d_in), dtype=jnp.float32)

    module = QKVProj(d_in, d_out, num_heads, k_p)
    q, k, v = module(x)
    jax.block_until_ready((q, k, v))

    dh = d_out // num_heads
    assert q.shape == (batch, num_heads, seq, dh)
    assert k.shape == (batch, num_heads, seq, dh)
    assert v.shape == (batch, num_heads, seq, dh)

    # Reference check against the PyTorch-equivalent computation using the
    # LOGICAL (unpermuted) weight and the original reshape/permute/chunk path,
    # so the init-time column permutation is validated end-to-end.
    x2d = x.reshape(batch * seq, d_in)
    ref_bf16 = jnp.dot(x2d.astype(jnp.bfloat16), module.w.astype(jnp.bfloat16),
                       preferred_element_type=jnp.float32) + module.b
    ref_f32 = x2d @ module.w + module.b

    def _split_ref(y2d):
        y4 = y2d.reshape(batch, seq, num_heads, -1).transpose(0, 2, 1, 3)
        return jnp.split(y4, 3, axis=-1)

    for got, want_bf, want_f32 in zip((q, k, v),
                                      _split_ref(ref_bf16),
                                      _split_ref(ref_f32)):
        assert jnp.allclose(got, want_bf, atol=1e-4), "bf16 reference mismatch"
        assert jnp.allclose(got, want_f32, atol=3e-2), "f32 reference mismatch"

    print("KERNEL_OK")
</pallas_src>

<mosaic_0001>
module attributes {stable_mosaic.version = 11 : i64} {
  func.func @_qkv_matmul_kernel(%arg0: i32, %arg1: i32, %arg2: i32, %arg3: memref<16x128xbf16, #tpu.memory_space<vmem>>, %arg4: memref<128x128xbf16, #tpu.memory_space<vmem>>, %arg5: memref<1x128xf32, #tpu.memory_space<vmem>>, %arg6: memref<16x128xf32, #tpu.memory_space<vmem>>, %arg7: memref<16x128xf32, #tpu.memory_space<vmem>>) attributes {dimension_semantics = [#tpu.dimension_semantics<parallel>, #tpu.dimension_semantics<parallel>, #tpu.dimension_semantics<arbitrary>], iteration_bounds = array<i64: 1, 1, 1>, scalar_prefetch = 0 : i64, scratch_operands = 1 : i64, tpu.core_type = #tpu.core_type<tc>, window_params = [{transform_indices = @transform_0, window_bounds = array<i64: 16, 128>}, {transform_indices = @transform_1, window_bounds = array<i64: 128, 128>}, {transform_indices = @transform_2, window_bounds = array<i64: 1, 128>}, {transform_indices = @transform_3, window_bounds = array<i64: 16, 128>}]} {
    %c0_i32 = arith.constant 0 : i32
    %0 = arith.cmpi eq, %arg2, %c0_i32 : i32
    %1 = arith.extui %0 : i1 to i32
    %c0_i32_0 = arith.constant 0 : i32
    %2 = arith.cmpi ne, %1, %c0_i32_0 : i32
    scf.if %2 {
      %c0_10 = arith.constant 0 : index
      %c0_11 = arith.constant 0 : index
      %12 = vector.load %arg5[%c0_10, %c0_11] : memref<1x128xf32, #tpu.memory_space<vmem>>, vector<1x128xf32>
      %13 = vector.shape_cast %12 : vector<1x128xf32> to vector<1x128xf32>
      %14 = vector.broadcast %13 : vector<1x128xf32> to vector<16x128xf32>
      %c0_12 = arith.constant 0 : index
      %c0_13 = arith.constant 0 : index
      %15 = vector.load %arg7[%c0_12, %c0_13] : memref<16x128xf32, #tpu.memory_space<vmem>>, vector<16x128xf32>
      tpu.vector_store %arg7[%c0_12, %c0_13], %14 {strides = array<i32>} : memref<16x128xf32, #tpu.memory_space<vmem>>, vector<16x128xf32>,
    } else {
    }
    %c0 = arith.constant 0 : index
    %c0_1 = arith.constant 0 : index
    %3 = vector.load %arg7[%c0, %c0_1] : memref<16x128xf32, #tpu.memory_space<vmem>>, vector<16x128xf32>
    %c0_2 = arith.constant 0 : index
    %c0_3 = arith.constant 0 : index
    %4 = vector.load %arg3[%c0_2, %c0_3] : memref<16x128xbf16, #tpu.memory_space<vmem>>, vector<16x128xbf16>
    %c0_4 = arith.constant 0 : index
    %c0_5 = arith.constant 0 : index
    %5 = vector.load %arg4[%c0_4, %c0_5] : memref<128x128xbf16, #tpu.memory_space<vmem>>, vector<128x128xbf16>
    %cst = arith.constant dense<0.000000e+00> : vector<16x128xf32>
    %6 = tpu.matmul %4, %5, %cst {dimension_numbers = #tpu.dot_dimension_numbers<[1], [0], [0], [1], [0, 0, 1, 1], [], []>} : vector<16x128xbf16>, vector<128x128xbf16>, vector<16x128xf32> -> vector<16x128xf32>
    %7 = arith.addf %3, %6 : vector<16x128xf32>
    %c0_6 = arith.constant 0 : index
    %c0_7 = arith.constant 0 : index
    %8 = vector.load %arg7[%c0_6, %c0_7] : memref<16x128xf32, #tpu.memory_space<vmem>>, vector<16x128xf32>
    tpu.vector_store %arg7[%c0_6, %c0_7], %7 {strides = array<i32>} : memref<16x128xf32, #tpu.memory_space<vmem>>, vector<16x128xf32>,
    %c0_i32_8 = arith.constant 0 : i32
    %9 = arith.cmpi eq, %arg2, %c0_i32_8 : i32
    %10 = arith.extui %9 : i1 to i32
    %c0_i32_9 = arith.constant 0 : i32
    %11 = arith.cmpi ne, %10, %c0_i32_9 : i32
    scf.if %11 {
      %c0_10 = arith.constant 0 : index
      %c0_11 = arith.constant 0 : index
      %12 = vector.load %arg7[%c0_10, %c0_11] : memref<16x128xf32, #tpu.memory_space<vmem>>, vector<16x128xf32>
      %c0_12 = arith.constant 0 : index
      %c0_13 = arith.constant 0 : index
      %13 = vector.load %arg6[%c0_12, %c0_13] : memref<16x128xf32, #tpu.memory_space<vmem>>, vector<16x128xf32>
      tpu.vector_store %arg6[%c0_12, %c0_13], %12 {strides = array<i32>} : memref<16x128xf32, #tpu.memory_space<vmem>>, vector<16x128xf32>,
    } else {
    }
    return
  }
  func.func @transform_0(%arg0: i32, %arg1: i32, %arg2: i32) -> (i32, i32) {
    %c0_i32 = arith.constant 0 : i32
    return %arg0, %arg2 : i32, i32
  }
  func.func @transform_1(%arg0: i32, %arg1: i32, %arg2: i32) -> (i32, i32) {
    %c0_i32 = arith.constant 0 : i32
    return %arg2, %arg1 : i32, i32
  }
  func.func @transform_2(%arg0: i32, %arg1: i32, %arg2: i32) -> (i32, i32) {
    %c0_i32 = arith.constant 0 : i32
    %c0_i32_0 = arith.constant 0 : i32
    return %c0_i32, %arg1 : i32, i32
  }
  func.func @transform_3(%arg0: i32, %arg1: i32, %arg2: i32) -> (i32, i32) {
    %c0_i32 = arith.constant 0 : i32
    return %arg0, %arg1 : i32, i32
  }
}

</mosaic_0001>

<bundles_post_ra>
// kernel: tpu_custom_call.1
= control target key start
LH: loop header
LB: loop body
LE: loop exit
PB: predicated region body
PF: predicated region fallthrough
CT: control target
= control target key end

     0   :  { %8 = vsyncpa [#allocation4], 0  ;;  %s398_s0 = inlined_call_operand.hbm [shape: bf16[16,128], index: 0, kind: input, shape index: {}]   ;;  %s399_s1 = inlined_call_operand.hbm [shape: bf16[128,128], index: 1, kind: input, shape index: {}]   ;;  %s400_s2 = inlined_call_operand.vmem [shape: f32[1,128], index: 2, kind: input, shape index: {}]   ;;  %s401_s3 = inlined_call_operand.hbm [shape: f32[16,128], index: 3, kind: output, shape index: {}]  }
   0x1   :  { %9 = vsyncpa [#allocation7], 0 }
   0x2   :  { %10 = vsyncpa [#allocation5], 0  ;;  %s330_s12 = smov [#allocation3]   ;;  %s258_s16 = scalar_lea.hbm %s398_s0, 128 }
   0x3   :  { %s16_s13 = sshll.u32 %s330_s12, 4  ;;  %p259_p0 = scmp.ne.s32.totalorder %s398_s0, %s258_s16  ;;  %s17_s13 = int_to_ptr.vmem [resolvable:$true] %s16_s13 }
   0x4   :  { %p262_p1 = scmp.lt.u32.totalorder %s258_s16, %s398_s0 }
   0x6   :  { %p264_p2 = pnand %p262_p1, %p259_p0 }
   0x8   :  { %267 = shalt.err (!%p264_p2)
}
   0x9   :  { %s268_s21 = scalar_lea.vmem %s17_s13, 128  ;;  %p273_p4 = scmp.lt.s32.totalorder %s17_s13, %s17_s13 }
   0xa   :  { %p269_p3 = scmp.ne.s32.totalorder %s17_s13, %s268_s21  ;;  %p274_p5 = scmp.lt.s32.totalorder %s268_s21, %s268_s21 }
   0xc   :  { %p275_p6 = por %p274_p5, %p273_p4 }
   0xe   :  { %p276_p7 = pnand %p275_p6, %p269_p3 }
  0x10   :  { %279 = shalt.err (!%p276_p7)
}
  0x11   :  { %s331_s22 = smov 64   ;;  %s332_s23 = smov 4  }
  0x12   :  { %22 = dma.hbm_to_vmem [thread:$0]  %s398_s0, 128, %s17_s13, [#allocation4], %s331_s22, %s331_s22, %s332_s23  }
  0x13   :  { %s333_s26 = smov [#allocation6]   ;;  %s280_s30 = scalar_lea.hbm %s399_s1, 1024 }
  0x14   :  { %s28_s27 = sshll.u32 %s333_s26, 4  ;;  %p281_p8 = scmp.ne.s32.totalorder %s399_s1, %s280_s30  ;;  %s29_s27 = int_to_ptr.vmem [resolvable:$true] %s28_s27 }
  0x15   :  { %p284_p9 = scmp.lt.u32.totalorder %s280_s30, %s399_s1 }
  0x17   :  { %p286_p10 = pnand %p284_p9, %p281_p8 }
  0x19   :  { %289 = shalt.err (!%p286_p10)
}
  0x1a   :  { %s290_s8 = scalar_lea.vmem %s29_s27, 1024  ;;  %p295_p12 = scmp.lt.s32.totalorder %s29_s27, %s29_s27 }
  0x1b   :  { %p291_p11 = scmp.ne.s32.totalorder %s29_s27, %s290_s8  ;;  %p296_p13 = scmp.lt.s32.totalorder %s290_s8, %s290_s8 }
  0x1d   :  { %p297_p0 = por %p296_p13, %p295_p12 }
  0x1f   :  { %p298_p1 = pnand %p297_p0, %p291_p11 }
  0x21   :  { %301 = shalt.err (!%p298_p1)
}
  0x22   :  { %34 = dma.hbm_to_vmem [thread:$0]  %s399_s1, 1024, %s29_s27, [#allocation7], %s331_s22, %s331_s22, %s332_s23  }
  0x23   :  { %324 = dma.done.wait [#allocation4], 128  }
  0x24   :  { %325 = vsyncadd [#allocation4], 4294967168 }
  0x25   :  { %326 = dma.done.wait [#allocation7], 1024  }
  0x26   :  { %327 = vsyncadd [#allocation7], 4294966272  ;;  %v334_v0 = vmov 0.0   ;;  %vm335_vm0 = vmmov 0   ;;  %v249_v1 = vld [vmem:[#allocation6] sm:$0xff]   ;;  %v250_v2 = vld [vmem:[#allocation6 + $0x8] sm:$0xff]  }
  0x27   :  { %220 = vmatprep.subr.bf16.mxu0 %v334_v0  ;;  %236 = vmatprep.mubr.msk.bf16.mxu0 %vm335_vm0, %v334_v0  ;;  %v251_v3 = vld [vmem:[#allocation6 + $0x10] sm:$0xff]   ;;  %v252_v4 = vld [vmem:[#allocation6 + $0x18] sm:$0xff]   ;;  %v253_v5 = vld [vmem:[#allocation6 + $0x20] sm:$0xff]   ;;  %s336_s11 = smov [#allocation8]  }
  0x28   :  { %221 = vmatpush3.bf16.msra.mxu0 %v249_v1  ;;  %v254_v6 = vld [vmem:[#allocation6 + $0x28] sm:$0xff]   ;;  %v255_v7 = vld [vmem:[#allocation6 + $0x30] sm:$0xff]   ;;  %v256_v8 = vld [vmem:[#allocation6 + $0x38] sm:$0xff]   ;;  %s188_s12 = sshll.u32 %s336_s11, 4  ;;  %s189_s12 = int_to_ptr.vmem [resolvable:$true] %s188_s12 }
  0x29   :  { %222 = vmatprep.subr.bf16.mxu0 %v334_v0  ;;  %v257_v9 = vld [vmem:[#allocation3] sm:$0xff]   ;;  %s302_s13 = scalar_lea.vmem %s189_s12, 256  ;;  %p307_p3 = scmp.lt.s32.totalorder %s189_s12, %s189_s12 }
  0x2a   :  { %v201_v10 = vld [vmem:[%s400_s2] ss:$0 sm:$0xff]  ;;  %p303_p2 = scmp.ne.s32.totalorder %s189_s12, %s302_s13  ;;  %p308_p4 = scmp.lt.s32.totalorder %s302_s13, %s302_s13 }
  0x2c   :  { %223 = vmatpush3.bf16.msra.mxu0 %v250_v2  ;;  %p309_p5 = por %p308_p4, %p307_p3 }
  0x2d   :  { %224 = vmatprep.subr.bf16.mxu0 %v334_v0 }
  0x2e   :  { %p310_p6 = pnand %p309_p5, %p303_p2 }
  0x30   :  { %225 = vmatpush3.bf16.msra.mxu0 %v251_v3 }
  0x31   :  { %226 = vmatprep.subr.bf16.mxu0 %v334_v0 }
  0x34   :  { %227 = vmatpush3.bf16.msra.mxu0 %v252_v4 }
  0x35   :  { %228 = vmatprep.subr.bf16.mxu0 %v334_v0 }
  0x38   :  { %229 = vmatpush3.bf16.msra.mxu0 %v253_v5 }
  0x39   :  { %230 = vmatprep.subr.bf16.mxu0 %v334_v0 }
  0x3c   :  { %231 = vmatpush3.bf16.msra.mxu0 %v254_v6 }
  0x3d   :  { %232 = vmatprep.subr.bf16.mxu0 %v334_v0 }
  0x40   :  { %233 = vmatpush3.bf16.msra.mxu0 %v255_v7 }
  0x41   :  { %234 = vmatprep.subr.bf16.mxu0 %v334_v0 }
  0x44   :  { %235 = vmatpush3.bf16.msra.mxu0 %v256_v8 }
  0x47   :  { %237 = vmatmul.mubr.bf16.vlgmr.msra.gmra.mrb[0].mxu0 %v257_v9 }
 0x11a   :  { %v165_v11 = vpop.f32.mrb[0].mxu0 }
 0x11b   :  { %v172_v12 = vadd.f32 %v201_v10, %v165_v11  ;;  %v238_v13 = vpop.f32.mrb[1].mxu0 }
 0x11c   :  { %v168_v14 = vpop.f32.mrb[2].mxu0 }
 0x11d   :  { %181 = vst [vmem:[#allocation8] sm:$0xff] %v172_v12  ;;  %v173_v15 = vadd.f32 %v201_v10, %v168_v14  ;;  %v239_v16 = vpop.f32.mrb[3].mxu0 }
 0x11f   :  { %182 = vst [vmem:[#allocation8 + $0x8] sm:$0xff] %v173_v15 }
 0x120   :  { %313 = shalt.err (!%p310_p6)
}
 0x121   :  { %s314_s15 = scalar_lea.hbm %s401_s3, 256 }
 0x122   :  { %p315_p7 = scmp.ne.s32.totalorder %s401_s3, %s314_s15  ;;  %p318_p8 = scmp.lt.u32.totalorder %s314_s15, %s401_s3 }
 0x124   :  { %p320_p9 = pnand %p318_p8, %p315_p7 }
 0x126   :  { %323 = shalt.err (!%p320_p9)
}
 0x127   :  { %s337_s20 = smov 128   ;;  %s338_s21 = smov 8  }
 0x128   :  { %194 = dma.vmem_to_hbm [thread:$0]  %s189_s12, 256, %s401_s3, [#allocation5], %s337_s20, %s337_s20, %s338_s21  }
 0x129   :  { %328 = dma.done.wait [#allocation5], 256  }
 0x12a   :  { %329 = vsyncadd [#allocation5], 4294967040 }
 0x12b   :  { %198 = vsyncpa [#allocation4], 1 }
 0x12c   :  { %199 = vsyncpa [#allocation7], 1 }
 0x12d   :  { %200 = vsyncpa [#allocation5], 1 }

</bundles_post_ra>
